<compile_context>
chip_gen: v5e
topology: v5e:2x2
jax: 0.10.0
libtpu: 0.0.40
codegen_flags: <defaults>
</compile_context>

<pallas_src>
import jax
import jax.numpy as jnp
from jax import lax
from jax.experimental import pallas as pl
from jax.experimental.pallas import tpu as pltpu


# ----------------------------------------------------------------------------
# Kernels
# ----------------------------------------------------------------------------
def _gcn_layer1_kernel(adj_ref, xk_ref, xi_ref, nsrc_k_ref, nsrc_i_ref,
                       ndst_i_ref, w1_ref, b1_ref, w2_ref, z2_ref, acc_ref):
    """Layer 1 (aggregate-first, F0 < F1) fused with layer 2's pre-projection.

    Accumulates  acc = A_hat @ (nsrc * X)  over K tiles, then at the last K tile:
        H1 = relu((ndst * acc) @ W1 + b1)
        Z2 = (nsrc * H1) @ W2            # handed to the layer-2 aggregation kernel
    """
    k = pl.program_id(1)

    @pl.when(k == 0)
    def _init():
        # Self-loop contribution of A_hat = A + I at this row tile.
        acc_ref[...] = nsrc_i_ref[...] * xi_ref[...]

    zk = nsrc_k_ref[...] * xk_ref[...]                      # [TK, F0] source-scaled feats
    acc_ref[...] += jnp.dot(adj_ref[...].astype(jnp.float32), zk,
                            preferred_element_type=jnp.float32)

    @pl.when(k == pl.num_programs(1) - 1)
    def _finalize():
        agg = ndst_i_ref[...] * acc_ref[...]                # D_in^{-1/2} row scaling
        h1 = jnp.maximum(
            jnp.dot(agg, w1_ref[...], preferred_element_type=jnp.float32)
            + b1_ref[...], 0.0)
        # Row scaling commutes with the feature-axis matmul:
        #   nsrc * (H1 @ W2) == (nsrc * H1) @ W2
        z2 = jnp.dot(nsrc_i_ref[...] * h1, w2_ref[...],
                     preferred_element_type=jnp.float32)
        z2_ref[...] = z2.astype(z2_ref.dtype)


def _gcn_layer2_kernel(adj_ref, zk_ref, zi_ref, ndst_i_ref, b2_ref, o_ref, acc_ref):
    """Layer 2 aggregation:  out = ndst * (A @ Z2 + Z2) + b2  (Z2 already source-scaled)."""
    k = pl.program_id(1)

    @pl.when(k == 0)
    def _init():
        acc_ref[...] = zi_ref[...]                          # self-loop term

    acc_ref[...] += jnp.dot(adj_ref[...].astype(jnp.float32), zk_ref[...],
                            preferred_element_type=jnp.float32)

    @pl.when(k == pl.num_programs(1) - 1)
    def _finalize():
        o_ref[...] = (ndst_i_ref[...] * acc_ref[...] + b2_ref[...]).astype(o_ref.dtype)


# ----------------------------------------------------------------------------
# Wrapper
# ----------------------------------------------------------------------------
def _pick_tile(n):
    """Largest tile keeping the lane dim a multiple of 128 (or the full extent)."""
    for t in (512, 256, 128):
        if n > t and n % t == 0:
            return t
    # TODO(synk): pad N to a multiple of 128 for ragged large graphs.
    return n


def simple_gcn_forward(adj, x, w1, b1, w2, b2):
    """2-layer GCN forward.  adj: [N,N] dense 0/1 (no self loops), x: [N,F0]."""
    n = adj.shape[0]
    f0, f1 = w1.shape
    f2 = w2.shape[1]

    # Cheap pre-pass (XLA): degree/norm vectors; self-loop folded as "+ 1" -> deg >= 1.
    ndst = lax.rsqrt(jnp.sum(adj, axis=1, keepdims=True) + 1.0)      # [N, 1] dest scaling
    nsrc = lax.rsqrt(jnp.sum(adj, axis=0, keepdims=True).T + 1.0)    # [N, 1] source scaling

    # bf16 adjacency: 0/1 values are exact; halves HBM traffic on the N^2 term.
    adj_b = adj.astype(jnp.bfloat16)

    b1_2d = b1.reshape(1, f1).astype(jnp.float32)
    b2_2d = b2.reshape(1, f2).astype(jnp.float32)

    tn = _pick_tile(n)
    tk = _pick_tile(n)
    grid = (n // tn, n // tk)
    cparams = pltpu.CompilerParams(
        dimension_semantics=("parallel", "arbitrary"),
        vmem_limit_bytes=48 * 1024 * 1024,
    )

    # ---- layer 1 (+ fused layer-2 pre-projection) -> Z2 = nsrc * H1 @ W2 ----
    z2 = pl.pallas_call(
        _gcn_layer1_kernel,
        out_shape=jax.ShapeDtypeStruct((n, f2), jnp.float32),
        grid_spec=pltpu.PrefetchScalarGridSpec(
            num_scalar_prefetch=0,
            grid=grid,
            in_specs=[
                pl.BlockSpec((tn, tk), lambda i, k: (i, k)),   # adjacency tile (bf16)
                pl.BlockSpec((tk, f0), lambda i, k: (k, 0)),   # X, source (k) tile
                pl.BlockSpec((tn, f0), lambda i, k: (i, 0)),   # X, dest (i) tile (self loop)
                pl.BlockSpec((tk, 1), lambda i, k: (k, 0)),    # nsrc, source tile
                pl.BlockSpec((tn, 1), lambda i, k: (i, 0)),    # nsrc, dest tile
                pl.BlockSpec((tn, 1), lambda i, k: (i, 0)),    # ndst, dest tile
                pl.BlockSpec((f0, f1), lambda i, k: (0, 0)),   # W1
                pl.BlockSpec((1, f1), lambda i, k: (0, 0)),    # b1
                pl.BlockSpec((f1, f2), lambda i, k: (0, 0)),   # W2
            ],
            out_specs=pl.BlockSpec((tn, f2), lambda i, k: (i, 0)),
            scratch_shapes=[pltpu.VMEM((tn, f0), jnp.float32)],
        ),
        compiler_params=cparams,
    )(adj_b, x, x, nsrc, nsrc, ndst, w1, b1_2d, w2)

    # ---- layer 2 aggregation: out = ndst * (A @ Z2 + Z2) + b2 ----
    h2 = pl.pallas_call(
        _gcn_layer2_kernel,
        out_shape=jax.ShapeDtypeStruct((n, f2), jnp.float32),
        grid_spec=pltpu.PrefetchScalarGridSpec(
            num_scalar_prefetch=0,
            grid=grid,
            in_specs=[
                pl.BlockSpec((tn, tk), lambda i, k: (i, k)),   # adjacency tile (bf16)
                pl.BlockSpec((tk, f2), lambda i, k: (k, 0)),   # Z2, source (k) tile
                pl.BlockSpec((tn, f2), lambda i, k: (i, 0)),   # Z2, dest (i) tile (self loop)
                pl.BlockSpec((tn, 1), lambda i, k: (i, 0)),    # ndst, dest tile
                pl.BlockSpec((1, f2), lambda i, k: (0, 0)),    # b2
            ],
            out_specs=pl.BlockSpec((tn, f2), lambda i, k: (i, 0)),
            scratch_shapes=[pltpu.VMEM((tn, f2), jnp.float32)],
        ),
        compiler_params=cparams,
    )(adj_b, z2, z2, ndst, b2_2d)

    # TODO(synk): for production, batch many graphs (or wider F2) into one call so the
    # output last dim is a multiple of 128 (lane-dense stores); at N=8/F2=16 the call
    # is launch-overhead bound regardless.
    return h2[None, :, :]                                     # h.unsqueeze(0)


# ----------------------------------------------------------------------------
# Pure-JAX reference (matches DGL GraphConv norm='both' after add_self_loop)
# ----------------------------------------------------------------------------
def simple_gcn_reference(adj, x, w1, b1, w2, b2):
    n = adj.shape[0]
    a = adj + jnp.eye(n, dtype=adj.dtype)
    din = jnp.sum(a, axis=1, keepdims=True)
    dout = jnp.sum(a, axis=0, keepdims=True)
    a = (1.0 / jnp.sqrt(din)) * a * (1.0 / jnp.sqrt(dout))
    h = jnp.maximum(a @ x @ w1 + b1, 0.0)
    h = a @ h @ w2 + b2
    return h[None]


if __name__ == "__main__":
    # SimpleGCN(original_features_num=4, in_features=32, out_features=16), 8-node graph.
    N, F0, F1, F2 = 8, 4, 32, 16

    key = jax.random.PRNGKey(0)
    k_feat, k_w1, k_b1, k_w2, k_b2, k_adj = jax.random.split(key, 6)

    # Node features (g.ndata['feat']).
    x = jax.random.normal(k_feat, (N, F0), dtype=jnp.float32)

    # Symmetric undirected adjacency (no self loops; kernel folds them in).
    upper = (jax.random.uniform(k_adj, (N, N)) > 0.5).astype(jnp.float32)
    upper = jnp.triu(upper, k=1)
    adj = upper + upper.T

    # Deterministic parameter init (GraphConv weight [in, out] + bias [out]).
    w1 = jax.random.normal(k_w1, (F0, F1), dtype=jnp.float32) * (1.0 / jnp.sqrt(F0))
    b1 = jax.random.normal(k_b1, (1, F1), dtype=jnp.float32) * 0.01
    w2 = jax.random.normal(k_w2, (F1, F2), dtype=jnp.float32) * (1.0 / jnp.sqrt(F1))
    b2 = jax.random.normal(k_b2, (1, F2), dtype=jnp.float32) * 0.01

    out = simple_gcn_forward(adj, x, w1, b1, w2, b2)
    out = jax.block_until_ready(out)

    ref = simple_gcn_reference(adj, x, w1, b1, w2, b2)
    assert out.shape == (1, N, F2), out.shape
    assert jnp.allclose(out, ref, atol=1e-5, rtol=1e-5), "mismatch vs JAX reference"

    print("KERNEL_OK")
</pallas_src>

<mosaic_0001>
module attributes {stable_mosaic.version = 11 : i64} {
  func.func @_gcn_layer1_kernel(%arg0: i32, %arg1: i32, %arg2: memref<8x8xbf16, #tpu.memory_space<vmem>>, %arg3: memref<8x4xf32, #tpu.memory_space<vmem>>, %arg4: memref<8x4xf32, #tpu.memory_space<vmem>>, %arg5: memref<8x1xf32, #tpu.memory_space<vmem>>, %arg6: memref<8x1xf32, #tpu.memory_space<vmem>>, %arg7: memref<8x1xf32, #tpu.memory_space<vmem>>, %arg8: memref<4x32xf32, #tpu.memory_space<vmem>>, %arg9: memref<1x32xf32, #tpu.memory_space<vmem>>, %arg10: memref<32x16xf32, #tpu.memory_space<vmem>>, %arg11: memref<8x16xf32, #tpu.memory_space<vmem>>, %arg12: memref<8x4xf32, #tpu.memory_space<vmem>>) attributes {dimension_semantics = [#tpu.dimension_semantics<parallel>, #tpu.dimension_semantics<arbitrary>], iteration_bounds = array<i64: 1, 1>, scalar_prefetch = 0 : i64, scratch_operands = 1 : i64, tpu.core_type = #tpu.core_type<tc>, window_params = [{transform_indices = @transform_0, window_bounds = array<i64: 8, 8>}, {transform_indices = @transform_1, window_bounds = array<i64: 8, 4>}, {transform_indices = @transform_2, window_bounds = array<i64: 8, 4>}, {transform_indices = @transform_3, window_bounds = array<i64: 8, 1>}, {transform_indices = @transform_4, window_bounds = array<i64: 8, 1>}, {transform_indices = @transform_5, window_bounds = array<i64: 8, 1>}, {pipeline_mode = #tpu.pipeline_mode<synchronous>, transform_indices = @transform_6, window_bounds = array<i64: 4, 32>}, {pipeline_mode = #tpu.pipeline_mode<synchronous>, transform_indices = @transform_7, window_bounds = array<i64: 1, 32>}, {pipeline_mode = #tpu.pipeline_mode<synchronous>, transform_indices = @transform_8, window_bounds = array<i64: 32, 16>}, {transform_indices = @transform_9, window_bounds = array<i64: 8, 16>}]} {
    %c0_i32 = arith.constant 0 : i32
    %0 = arith.cmpi eq, %arg1, %c0_i32 : i32
    %1 = arith.extui %0 : i1 to i32
    %c0_i32_0 = arith.constant 0 : i32
    %2 = arith.cmpi ne, %1, %c0_i32_0 : i32
    scf.if %2 {
      %c0_12 = arith.constant 0 : index
      %c0_13 = arith.constant 0 : index
      %16 = vector.load %arg6[%c0_12, %c0_13] : memref<8x1xf32, #tpu.memory_space<vmem>>, vector<8x1xf32>
      %c0_14 = arith.constant 0 : index
      %c0_15 = arith.constant 0 : index
      %17 = vector.load %arg4[%c0_14, %c0_15] : memref<8x4xf32, #tpu.memory_space<vmem>>, vector<8x4xf32>
      %18 = vector.broadcast %16 : vector<8x1xf32> to vector<8x4xf32>
      %19 = arith.mulf %18, %17 : vector<8x4xf32>
      %c0_16 = arith.constant 0 : index
      %c0_17 = arith.constant 0 : index
      %20 = vector.load %arg12[%c0_16, %c0_17] : memref<8x4xf32, #tpu.memory_space<vmem>>, vector<8x4xf32>
      tpu.vector_store %arg12[%c0_16, %c0_17], %19 {strides = array<i32>} : memref<8x4xf32, #tpu.memory_space<vmem>>, vector<8x4xf32>,
    } else {
    }
    %c0 = arith.constant 0 : index
    %c0_1 = arith.constant 0 : index
    %3 = vector.load %arg5[%c0, %c0_1] : memref<8x1xf32, #tpu.memory_space<vmem>>, vector<8x1xf32>
    %c0_2 = arith.constant 0 : index
    %c0_3 = arith.constant 0 : index
    %4 = vector.load %arg3[%c0_2, %c0_3] : memref<8x4xf32, #tpu.memory_space<vmem>>, vector<8x4xf32>
    %5 = vector.broadcast %3 : vector<8x1xf32> to vector<8x4xf32>
    %6 = arith.mulf %5, %4 : vector<8x4xf32>
    %c0_4 = arith.constant 0 : index
    %c0_5 = arith.constant 0 : index
    %7 = vector.load %arg12[%c0_4, %c0_5] : memref<8x4xf32, #tpu.memory_space<vmem>>, vector<8x4xf32>
    %c0_6 = arith.constant 0 : index
    %c0_7 = arith.constant 0 : index
    %8 = vector.load %arg2[%c0_6, %c0_7] : memref<8x8xbf16, #tpu.memory_space<vmem>>, vector<8x8xbf16>
    %9 = arith.extf %8 : vector<8x8xbf16> to vector<8x8xf32>
    %cst = arith.constant dense<0.000000e+00> : vector<8x4xf32>
    %10 = tpu.matmul %9, %6, %cst {dimension_numbers = #tpu.dot_dimension_numbers<[1], [0], [0], [1], [0, 0, 1, 1], [], []>} : vector<8x8xf32>, vector<8x4xf32>, vector<8x4xf32> -> vector<8x4xf32>
    %11 = arith.addf %7, %10 : vector<8x4xf32>
    %c0_8 = arith.constant 0 : index
    %c0_9 = arith.constant 0 : index
    %12 = vector.load %arg12[%c0_8, %c0_9] : memref<8x4xf32, #tpu.memory_space<vmem>>, vector<8x4xf32>
    tpu.vector_store %arg12[%c0_8, %c0_9], %11 {strides = array<i32>} : memref<8x4xf32, #tpu.memory_space<vmem>>, vector<8x4xf32>,
    %c0_i32_10 = arith.constant 0 : i32
    %13 = arith.cmpi eq, %arg1, %c0_i32_10 : i32
    %14 = arith.extui %13 : i1 to i32
    %c0_i32_11 = arith.constant 0 : i32
    %15 = arith.cmpi ne, %14, %c0_i32_11 : i32
    scf.if %15 {
      %c0_12 = arith.constant 0 : index
      %c0_13 = arith.constant 0 : index
      %16 = vector.load %arg7[%c0_12, %c0_13] : memref<8x1xf32, #tpu.memory_space<vmem>>, vector<8x1xf32>
      %c0_14 = arith.constant 0 : index
      %c0_15 = arith.constant 0 : index
      %17 = vector.load %arg12[%c0_14, %c0_15] : memref<8x4xf32, #tpu.memory_space<vmem>>, vector<8x4xf32>
      %18 = vector.broadcast %16 : vector<8x1xf32> to vector<8x4xf32>
      %19 = arith.mulf %18, %17 : vector<8x4xf32>
      %c0_16 = arith.constant 0 : index
      %c0_17 = arith.constant 0 : index
      %20 = vector.load %arg8[%c0_16, %c0_17] : memref<4x32xf32, #tpu.memory_space<vmem>>, vector<4x32xf32>
      %cst_18 = arith.constant dense<0.000000e+00> : vector<8x32xf32>
      %21 = tpu.matmul %19, %20, %cst_18 {dimension_numbers = #tpu.dot_dimension_numbers<[1], [0], [0], [1], [0, 0, 1, 1], [], []>} : vector<8x4xf32>, vector<4x32xf32>, vector<8x32xf32> -> vector<8x32xf32>
      %c0_19 = arith.constant 0 : index
      %c0_20 = arith.constant 0 : index
      %22 = vector.load %arg9[%c0_19, %c0_20] : memref<1x32xf32, #tpu.memory_space<vmem>>, vector<1x32xf32>
      %23 = vector.broadcast %22 : vector<1x32xf32> to vector<8x32xf32>
      %24 = arith.addf %21, %23 : vector<8x32xf32>
      %cst_21 = arith.constant 0.000000e+00 : f32
      %25 = vector.broadcast %cst_21 : f32 to vector<8x32xf32>
      %26 = arith.maximumf %24, %25 : vector<8x32xf32>
      %c0_22 = arith.constant 0 : index
      %c0_23 = arith.constant 0 : index
      %27 = vector.load %arg6[%c0_22, %c0_23] : memref<8x1xf32, #tpu.memory_space<vmem>>, vector<8x1xf32>
      %28 = vector.broadcast %27 : vector<8x1xf32> to vector<8x32xf32>
      %29 = arith.mulf %28, %26 : vector<8x32xf32>
      %c0_24 = arith.constant 0 : index
      %c0_25 = arith.constant 0 : index
      %30 = vector.load %arg10[%c0_24, %c0_25] : memref<32x16xf32, #tpu.memory_space<vmem>>, vector<32x16xf32>
      %cst_26 = arith.constant dense<0.000000e+00> : vector<8x16xf32>
      %31 = tpu.matmul %29, %30, %cst_26 {dimension_numbers = #tpu.dot_dimension_numbers<[1], [0], [0], [1], [0, 0, 1, 1], [], []>} : vector<8x32xf32>, vector<32x16xf32>, vector<8x16xf32> -> vector<8x16xf32>
      %c0_27 = arith.constant 0 : index
      %c0_28 = arith.constant 0 : index
      %32 = vector.load %arg11[%c0_27, %c0_28] : memref<8x16xf32, #tpu.memory_space<vmem>>, vector<8x16xf32>
      tpu.vector_store %arg11[%c0_27, %c0_28], %31 {strides = array<i32>} : memref<8x16xf32, #tpu.memory_space<vmem>>, vector<8x16xf32>,
    } else {
    }
    return
  }
  func.func @transform_0(%arg0: i32, %arg1: i32) -> (i32, i32) {
    %c0_i32 = arith.constant 0 : i32
    return %arg0, %arg1 : i32, i32
  }
  func.func @transform_1(%arg0: i32, %arg1: i32) -> (i32, i32) {
    %c0_i32 = arith.constant 0 : i32
    %c0_i32_0 = arith.constant 0 : i32
    return %arg1, %c0_i32 : i32, i32
  }
  func.func @transform_2(%arg0: i32, %arg1: i32) -> (i32, i32) {
    %c0_i32 = arith.constant 0 : i32
    %c0_i32_0 = arith.constant 0 : i32
    return %arg0, %c0_i32 : i32, i32
  }
  func.func @transform_3(%arg0: i32, %arg1: i32) -> (i32, i32) {
    %c0_i32 = arith.constant 0 : i32
    %c0_i32_0 = arith.constant 0 : i32
    return %arg1, %c0_i32 : i32, i32
  }
  func.func @transform_4(%arg0: i32, %arg1: i32) -> (i32, i32) {
    %c0_i32 = arith.constant 0 : i32
    %c0_i32_0 = arith.constant 0 : i32
    return %arg0, %c0_i32 : i32, i32
  }
  func.func @transform_5(%arg0: i32, %arg1: i32) -> (i32, i32) {
    %c0_i32 = arith.constant 0 : i32
    %c0_i32_0 = arith.constant 0 : i32
    return %arg0, %c0_i32 : i32, i32
  }
  func.func @transform_6(%arg0: i32, %arg1: i32) -> (i32, i32) {
    %c0_i32 = arith.constant 0 : i32
    %c0_i32_0 = arith.constant 0 : i32
    %c0_i32_1 = arith.constant 0 : i32
    return %c0_i32, %c0_i32_0 : i32, i32
  }
  func.func @transform_7(%arg0: i32, %arg1: i32) -> (i32, i32) {
    %c0_i32 = arith.constant 0 : i32
    %c0_i32_0 = arith.constant 0 : i32
    %c0_i32_1 = arith.constant 0 : i32
    return %c0_i32, %c0_i32_0 : i32, i32
  }
  func.func @transform_8(%arg0: i32, %arg1: i32) -> (i32, i32) {
    %c0_i32 = arith.constant 0 : i32
    %c0_i32_0 = arith.constant 0 : i32
    %c0_i32_1 = arith.constant 0 : i32
    return %c0_i32, %c0_i32_0 : i32, i32
  }
  func.func @transform_9(%arg0: i32, %arg1: i32) -> (i32, i32) {
    %c0_i32 = arith.constant 0 : i32
    %c0_i32_0 = arith.constant 0 : i32
    return %arg0, %c0_i32 : i32, i32
  }
}

</mosaic_0001>

<bundles_post_ra>
// kernel: tpu_custom_call.1
= control target key start
LH: loop header
LB: loop body
LE: loop exit
PB: predicated region body
PF: predicated region fallthrough
CT: control target
= control target key end

     0   :  { %v217_v1 = vmov 0   ;;  %s308_s0 = inlined_call_operand.vmem [shape: bf16[8,8], index: 0, kind: input, shape index: {}]   ;;  %s309_s1 = inlined_call_operand.vmem [shape: f32[8,4], index: 1, kind: input, shape index: {}]   ;;  %s310_s2 = inlined_call_operand.vmem [shape: f32[8,4], index: 2, kind: input, shape index: {}]   ;;  %s311_s3 = inlined_call_operand.vmem [shape: f32[8,1], index: 3, kind: input, shape index: {}]   ;;  %s312_s4 = inlined_call_operand.vmem [shape: f32[8,1], index: 4, kind: input, shape index: {}]   ;;  %s313_s5 = inlined_call_operand.vmem [shape: f32[8,1], index: 5, kind: input, shape index: {}]   ;;  %s314_s6 = inlined_call_operand.vmem [shape: f32[4,32], index: 6, kind: input, shape index: {}]   ;;  %s315_s7 = inlined_call_operand.vmem [shape: f32[1,32], index: 7, kind: input, shape index: {}]   ;;  %s316_s8 = inlined_call_operand.vmem [shape: f32[32,16], index: 8, kind: input, shape index: {}]   ;;  %s317_s9 = inlined_call_operand.hbm [shape: f32[8,16], index: 9, kind: output, shape index: {}]  }
   0x1   :  { %v47_v0 = vld [vmem:[%s311_s3] sm:$0xff]  ;;  %188 = vset.pattern.permute.xlu0 %v217_v1  ;;  %189 = vset.pattern.permute.xlu1 %v217_v1 }
   0x2   :  { %14 = vsyncpa [#allocation4], 0  ;;  %51 = vperm.xlu0 %188, %v47_v0   ;;  %v37_v2 = vld [vmem:[%s312_s4] sm:$0xff]  ;;  %vm58_vm0 = vcmask 64512   ;;  %vm45_vm1 = vcmask 31744   ;;  %vm104_vm2 = vcmask 1043456  }
   0x3   :  { %v88_v3 = vld [vmem:[%s313_s5] sm:$0xff]  ;;  %v139_v19 = vld [vmem:[%s316_s8 + $0x18] sm:$0xff]  ;;  %v138_v20 = vld [vmem:[%s316_s8 + $0x10] sm:$0xff]  ;;  %vm140_vm3 = vcmask 261120   ;;  %s218_s26 = smov [#allocation3]   ;;  %s173_s30 = sshll.u32 %s317_s9, 4  ;;  %s174_s30 = int_to_ptr.hbm [resolvable:$true] %s173_s30 }
   0x4   :  { %92 = vperm.xlu1 %189, %v88_v3   ;;  %v56_v4 = vld [vmem:[%s308_s0] sm:$0xf]  ;;  %156 = vmatpush.msra.mxu2 %v139_v19  ;;  %v137_v21 = vld [vmem:[%s316_s8 + $0x8] sm:$0xff]  ;;  %s171_s27 = sshll.u32 %s218_s26, 4  ;;  %vm164_vm4 = vcmask 130048   ;;  %s172_s27 = int_to_ptr.vmem [resolvable:$true] %s171_s27 }
   0x5   :  { %v48_v5 = vld [vmem:[%s309_s1] sm:$0xff]  ;;  %v57_v7 = vunpack.c.l.bf16 %v56_v4 }
   0x6   :  { %v38_v9 = vld [vmem:[%s310_s2] sm:$0xff]  ;;  %157 = vmatpush.msra.mxu2 %v138_v20 }
   0x7   :  { %v96_v12 = vld [vmem:[%s314_s6] sm:$0xf] }
   0x8   :  { %183 = vmatpush.msk.msra.mxu1 %vm104_vm2, %v96_v12  ;;  %158 = vmatpush.msra.mxu2 %v137_v21  ;;  %v136_v22 = vld [vmem:[%s316_s8] sm:$0xff] }
   0x9   :  { %v190_v23 = vld [vmem:[%s315_s7] ss:$0 sm:$0xff] }
   0xa   :  { %41 = vperm.xlu0 %188, %v37_v2   ;;  %159 = vmatpush.msra.mxu2 %v136_v22 }
   0xc   :  { %132 = vperm.xlu1 %189, %v37_v2  }
  0x74   :  { %v52_v6 = vpop.permute.xlu0 %51 }
  0x75   :  { %v54_v8 = vmul.f32 %v52_v6, %v48_v5 }
  0x76   :  { %v93_v16 = vpop.permute.xlu1 %92 }
  0x77   :  { %77 = vmatpush.msra.mxu0 %v54_v8 }
  0x78   :  { %182 = vmatmul.msk.f32.vlgmr.msra.gmra.mxu0 %vm58_vm0, %v57_v7 }
  0x7c   :  { %v42_v10 = vpop.permute.xlu0 %41 }
  0x7d   :  { %v44_v11 = vmul.f32 %v42_v10, %v38_v9 }
  0x7e   :  { %v133_v27 = vpop.permute.xlu1 %132 }
  0x7f   :  { %46 = vst.msk [vmem:[#allocation2] sm:$0xff] %vm45_vm1, %v44_v11 }
  0x86   :  { %v55_v13 = vld [vmem:[#allocation2] sm:$0xff] }
  0xf5   :  { %v79_v14 = vpop.f32.mrf.mxu0 }
  0xf6   :  { %v82_v15 = vadd.f32 %v79_v14, %v55_v13 }
  0xf8   :  { %84 = vst.msk [vmem:[#allocation2] sm:$0xff] %vm45_vm1, %v82_v15 }
  0xff   :  { %v89_v17 = vld [vmem:[#allocation2] sm:$0xff] }
 0x100   :  { %v95_v18 = vmul.f32 %v93_v16, %v89_v17 }
 0x102   :  { %184 = vmatmul.msk.f32.vlgmr.msra.gmra.mxu1 %vm45_vm1, %v95_v18 }
 0x17f   :  { %v125_v24 = vpop.f32.mrf.mxu1 }
 0x180   :  { %v126_v25 = vadd.f32 %v190_v23, %v125_v24 }
 0x182   :  { %v128_v26 = vmax.f32 %v126_v25, 0.0 }
 0x184   :  { %v135_v28 = vmul.f32 %v133_v27, %v128_v26 }
 0x186   :  { %185 = vmatmul.msk.f32.vlgmr.msra.gmra.mxu2 %vm140_vm3, %v135_v28 }
 0x209   :  { %v161_v29 = vpop.f32.mrf.mxu2 }
 0x20a   :  { %165 = vst.msk [vmem:[#allocation3] sm:$0xff] %vm164_vm4, %v161_v29 }
 0x20b   :  { %176 = dma.vmem_to_hbm [thread:$0]  %s172_s27, 128, %s174_s30, [#allocation4]  }
 0x20c   :  { %215 = dma.done.wait [#allocation4], 128  }
 0x20d   :  { %216 = vsyncadd [#allocation4], 4294967168 }
 0x20e   :  { %181 = vsyncpa [#allocation4], 1 }

</bundles_post_ra>
